<compile_context>
chip_gen: v7x
topology: tpu7x:2x2x1
jax: 0.10.0
libtpu: 0.0.40
codegen_flags: <defaults>
</compile_context>

<pallas_src>
import functools

import jax
import jax.numpy as jnp
from jax import lax
from jax.experimental import pallas as pl
from jax.experimental.pallas import tpu as pltpu

_SUBLANE = 8      # f32 sublane tile
_LANE = 128       # lane tile
_NEG_BIG = -1e30  # finite "-inf" for masking padded key columns


def _attention_kernel(q_ref, keys_t_ref, w_ref, out_ref, *, n_valid):
    """q_ref [8,K], keys_t_ref [K,N_pad], w_ref [K,K] -> out_ref [8,N_pad]."""
    # Projected query: [8,K] @ [K,K] -> [8,K]  (scale already folded into W).
    qp = jnp.dot(q_ref[...], w_ref[...], preferred_element_type=jnp.float32)

    # Scores: [8,K] @ [K,N_pad] -> [8,N_pad]  (keys pre-transposed in wrapper).
    scores = jnp.dot(qp, keys_t_ref[...], preferred_element_type=jnp.float32)

    # Mask zero-padded key columns so they receive exactly zero weight.
    col = lax.broadcasted_iota(jnp.int32, scores.shape, dimension=1)
    scores = jnp.where(col < n_valid, scores, _NEG_BIG)

    # Numerically-stable softmax over the (lane) key axis.
    m = jnp.max(scores, axis=-1, keepdims=True)
    e = jnp.exp(scores - m)
    denom = jnp.sum(e, axis=-1, keepdims=True)

    # Approx reciprocal (EUP slot) + one Newton refinement -> full f32 accuracy.
    r = pl.reciprocal(denom, approx=True)
    r = r * (2.0 - denom * r)
    out_ref[...] = (e * r).astype(out_ref.dtype)


@jax.jit
def self_attention(query, keys, query_weight, key_weight):
    """Pallas equivalent of SelfAttention.forward.

    query:  [K]   float32
    keys:   [N,K] float32
    returns [N]   float32 softmax weights (== weights.squeeze(0) for N > 1).
    """
    k_dim = query.shape[-1]
    n = keys.shape[0]
    n_pad = ((n + _LANE - 1) // _LANE) * _LANE
    inv_k = 1.0 / float(k_dim)  # (1/sqrt(K)) applied to both projections -> 1/K

    # Pre-fold both projections and the combined scale into a single weight.
    w = (query_weight.astype(jnp.float32) @ key_weight.astype(jnp.float32).T) * inv_k

    # Sublane-pad the single query row into a dense [8, K] block (row 0 valid).
    q_blk = jnp.zeros((_SUBLANE, k_dim), jnp.float32).at[0, :].set(
        query.astype(jnp.float32))

    # Pre-transpose keys to canonical [K, N] MXU layout and lane-pad N to 128.
    keys_t = jnp.pad(keys.astype(jnp.float32).T, ((0, 0), (0, n_pad - n)))

    kernel = functools.partial(_attention_kernel, n_valid=n)

    out = pl.pallas_call(
        kernel,
        out_shape=jax.ShapeDtypeStruct((_SUBLANE, n_pad), jnp.float32),
        in_specs=[
            pl.BlockSpec(memory_space=pltpu.MemorySpace.VMEM),  # q_blk  [8, K]
            pl.BlockSpec(memory_space=pltpu.MemorySpace.VMEM),  # keys^T [K, N_pad]
            pl.BlockSpec(memory_space=pltpu.MemorySpace.VMEM),  # W      [K, K]
        ],
        out_specs=pl.BlockSpec(memory_space=pltpu.MemorySpace.VMEM),
    )(q_blk, keys_t, w)

    # Row 0 holds the real query; slice away the lane padding.  Matches
    # weights.squeeze(0) (a no-op on the [N] vector for N > 1).
    return out[0, :n]


if __name__ == "__main__":
    K_DIM = 32   # k_dim in the PyTorch module
    N = 8        # number of keys

    key = jax.random.PRNGKey(0)
    k_q, k_k, k_wq, k_wk = jax.random.split(key, 4)

    # Deterministic parameter init (torch.randn -> standard normal).
    query_weight = jax.random.normal(k_wq, (K_DIM, K_DIM), dtype=jnp.float32)
    key_weight = jax.random.normal(k_wk, (K_DIM, K_DIM), dtype=jnp.float32)

    # Inputs consistent with forward(): query [K], keys [N, K].
    query = jax.random.normal(k_q, (K_DIM,), dtype=jnp.float32)
    keys = jax.random.normal(k_k, (N, K_DIM), dtype=jnp.float32)

    weights = self_attention(query, keys, query_weight, key_weight)
    jax.block_until_ready(weights)

    # Plain-JAX reference mirroring the PyTorch module exactly (project every
    # key, divide both sides by sqrt(K)).  The kernel uses a mathematically
    # equivalent reassociation, so allow f32 rounding-order differences.
    scale = jnp.sqrt(jnp.float32(K_DIM))
    q_ref = (query @ query_weight) / scale
    k_ref = (keys @ key_weight) / scale
    ref = jax.nn.softmax(q_ref @ k_ref.T, axis=-1)

    assert weights.shape == (N,)
    assert jnp.allclose(jnp.sum(weights), 1.0, atol=1e-4)
    assert jnp.allclose(weights, ref, atol=1e-4, rtol=1e-4), (
        f"max abs err = {float(jnp.max(jnp.abs(weights - ref)))}")

    print("KERNEL_OK")
</pallas_src>

<mosaic_0001>
module attributes {stable_mosaic.version = 11 : i64} {
  func.func @_attention_kernel(%arg0: memref<8x32xf32, #tpu.memory_space<vmem>>, %arg1: memref<32x128xf32, #tpu.memory_space<vmem>>, %arg2: memref<32x32xf32, #tpu.memory_space<vmem>>, %arg3: memref<8x128xf32, #tpu.memory_space<vmem>>) attributes {dimension_semantics = [], scalar_prefetch = 0 : i64, scratch_operands = 0 : i64, tpu.core_type = #tpu.core_type<tc>} {
    %c0 = arith.constant 0 : index
    %c0_0 = arith.constant 0 : index
    %0 = vector.load %arg0[%c0, %c0_0] : memref<8x32xf32, #tpu.memory_space<vmem>>, vector<8x32xf32>
    %c0_1 = arith.constant 0 : index
    %c0_2 = arith.constant 0 : index
    %1 = vector.load %arg2[%c0_1, %c0_2] : memref<32x32xf32, #tpu.memory_space<vmem>>, vector<32x32xf32>
    %cst = arith.constant dense<0.000000e+00> : vector<8x32xf32>
    %2 = tpu.matmul %0, %1, %cst {dimension_numbers = #tpu.dot_dimension_numbers<[1], [0], [0], [1], [0, 0, 1, 1], [], []>} : vector<8x32xf32>, vector<32x32xf32>, vector<8x32xf32> -> vector<8x32xf32>
    %c0_3 = arith.constant 0 : index
    %c0_4 = arith.constant 0 : index
    %3 = vector.load %arg1[%c0_3, %c0_4] : memref<32x128xf32, #tpu.memory_space<vmem>>, vector<32x128xf32>
    %cst_5 = arith.constant dense<0.000000e+00> : vector<8x128xf32>
    %4 = tpu.matmul %2, %3, %cst_5 {dimension_numbers = #tpu.dot_dimension_numbers<[1], [0], [0], [1], [0, 0, 1, 1], [], []>} : vector<8x32xf32>, vector<32x128xf32>, vector<8x128xf32> -> vector<8x128xf32>
    %5 = tpu.iota {dimensions = array<i32: 1>} : vector<8x128xi32>
    %c8_i32 = arith.constant 8 : i32
    %6 = vector.broadcast %c8_i32 : i32 to vector<8x128xi32>
    %7 = arith.cmpi slt, %5, %6 : vector<8x128xi32>
    %cst_6 = arith.constant -1.000000e+30 : f32
    %8 = vector.broadcast %cst_6 : f32 to vector<8x128xf32>
    %9 = arith.select %7, %4, %8 : vector<8x128xi1>, vector<8x128xf32>
    %cst_7 = arith.constant dense<0xFF800000> : vector<8xf32>
    %10 = vector.multi_reduction <maximumf>, %9, %cst_7 [1] : vector<8x128xf32> to vector<8xf32>
    %11 = vector.shape_cast %10 : vector<8xf32> to vector<8x1xf32>
    %12 = vector.broadcast %11 : vector<8x1xf32> to vector<8x128xf32>
    %13 = arith.subf %9, %12 : vector<8x128xf32>
    %14 = math.exp %13 : vector<8x128xf32>
    %cst_8 = arith.constant dense<0.000000e+00> : vector<8xf32>
    %15 = vector.multi_reduction <add>, %14, %cst_8 [1] : vector<8x128xf32> to vector<8xf32>
    %16 = vector.shape_cast %15 : vector<8xf32> to vector<8x1xf32>
    %17 = tpu.reciprocal %16 {approx = true} : vector<8x1xf32> -> vector<8x1xf32>
    %18 = arith.mulf %16, %17 : vector<8x1xf32>
    %cst_9 = arith.constant 2.000000e+00 : f32
    %19 = vector.broadcast %cst_9 : f32 to vector<8x1xf32>
    %20 = arith.subf %19, %18 : vector<8x1xf32>
    %21 = arith.mulf %17, %20 : vector<8x1xf32>
    %22 = vector.broadcast %21 : vector<8x1xf32> to vector<8x128xf32>
    %23 = arith.mulf %14, %22 : vector<8x128xf32>
    %c0_10 = arith.constant 0 : index
    %c0_11 = arith.constant 0 : index
    %24 = vector.load %arg3[%c0_10, %c0_11] : memref<8x128xf32, #tpu.memory_space<vmem>>, vector<8x128xf32>
    tpu.vector_store %arg3[%c0_10, %c0_11], %23 {strides = array<i32>} : memref<8x128xf32, #tpu.memory_space<vmem>>, vector<8x128xf32>,
    return
  }
}

</mosaic_0001>

<bundles_post_ra>
// kernel: self_attention.1
= control target key start
LH: loop header
LB: loop body
LE: loop exit
PB: predicated region body
PF: predicated region fallthrough
CT: control target
= control target key end

     0   :  { %v244_v0 = vmov 0.0|0.0   ;;  %vm245_vm0 = vmmov 0   ;;  %v246_v4 = vmov 0.0   ;;  %vm19_vm1 = vcmask 261120   ;;  %s297_s2 = inlined_call_operand.vmem [shape: f32[32,32], index: 2, kind: input, shape index: {}]   ;;  %s298_s1 = inlined_call_operand.vmem [shape: f32[32,128], index: 1, kind: input, shape index: {}]   ;;  %s299_s0 = inlined_call_operand.vmem [shape: f32[8,32], index: 0, kind: input, shape index: {}]   ;;  %s300_s3 = inlined_call_operand.vmem [shape: f32[8,128], index: 3, kind: output, shape index: {}]  }
   0x1   :  { %225 = vmatprep.subr.bf16.mxu0 %v244_v0  ;;  %v15_v1 = vld [vmem:[%s297_s2] sm:$0xff]  ;;  %v16_v2 = vld [vmem:[%s297_s2 + $0x8] sm:$0xff]  ;;  %v17_v3 = vld [vmem:[%s297_s2 + $0x10] sm:$0xff]  ;;  %211 = vmatprep.mubr.msk.f32.mxu0 %vm245_vm0, %v246_v4  ;;  %v170_v17 = vlaneseq }
   0x2   :  { %v226_v5 = vpack.c.bf16 %v16_v2, %v15_v1  ;;  %v18_v6 = vld [vmem:[%s297_s2 + $0x18] sm:$0xff]  ;;  %231 = vmatprep.subr.bf16.mxu1 %v244_v0  ;;  %v93_v7 = vld [vmem:[%s298_s1] sm:$0xff]  ;;  %222 = vmatprep.mubr.msk.f32.mxu1 %vm245_vm0, %v246_v4  ;;  %v94_v8 = vld [vmem:[%s298_s1 + $0x8] sm:$0xff] }
   0x3   :  { %v95_v9 = vld [vmem:[%s298_s1 + $0x10] sm:$0xff]  ;;  %v96_v10 = vld [vmem:[%s298_s1 + $0x18] sm:$0xff]  ;;  %v229_v11 = vpack.c.bf16 %v18_v6, %v17_v3  ;;  %v232_v12 = vpack.c.bf16 %v94_v8, %v93_v7  ;;  %v14_v14 = vld [vmem:[%s299_s0] sm:$0xff]  ;;  %v171_v18 = vand.u32 127, %v170_v17 }
   0x4   :  { %227 = vmatpush3.bf16.msra.mxu0 %v226_v5  ;;  %v235_v13 = vpack.c.bf16 %v96_v10, %v95_v9 }
   0x5   :  { %228 = vmatprep.subr.bf16.mxu0 %v244_v0  ;;  %233 = vmatpush3.bf16.msra.mxu1 %v232_v12  ;;  %vm172_vm2 = vcmp.lt.s32.totalorder %v171_v18, 8 }
   0x6   :  { %234 = vmatprep.subr.bf16.mxu1 %v244_v0 }
   0x8   :  { %230 = vmatpush3.bf16.msra.mxu0 %v229_v11 }
   0x9   :  { %236 = vmatpush3.bf16.msra.mxu1 %v235_v13 }
   0xb   :  { %212 = vmatmul.mubr.msk.f32.vlgmr.msra.gmra.mrb[0].mxu0 %vm19_vm1, %v14_v14 }
  0xde   :  { %v89_v15 = vpop.f32.mrb[0].mxu0 }
  0xdf   :  { %v213_v16 = vpop.f32.mrb[1].mxu0  ;;  %223 = vmatmul.mubr.msk.f32.vlgmr.msra.gmra.mrb[0].mxu1 %vm19_vm1, %v89_v15 }
 0x1b2   :  { %v166_v19 = vpop.f32.mrb[0].mxu1 }
 0x1b3   :  { %v224_v20 = vpop.f32.mrb[1].mxu1  ;;  %v173_v21 = vsel %vm172_vm2, %v166_v19, -1e+30 }
 0x1b4   :  { %174 = vmax.xlane.f32.xlu0 %v173_v21 }
 0x241   :  { %v175_v22 = vpop.xlane.xlu0 %174 }
 0x242   :  { %v176_v23 = vsub.f32 %v173_v21, %v175_v22 }
 0x244   :  { %v177_v24 = vmul.f32 1.442695, %v176_v23 }
 0x246   :  { %240 = vpow2.f32 %v177_v24 }
 0x250   :  { %v241_v25 = vpop.eup %240 }
 0x251   :  { %179 = vadd.xlane.f32.xlu0 %v241_v25 }
 0x2de   :  { %v180_v26 = vpop.xlane.xlu0 %179 }
 0x2df   :  { %242 = vrcp.f32 %v180_v26 }
 0x2e9   :  { %v243_v27 = vpop.eup %242 }
 0x2ea   :  { %v182_v28 = vmul.f32 %v243_v27, %v180_v26 }
 0x2ec   :  { %v183_v29 = vsub.f32 2.0, %v182_v28 }
 0x2ee   :  { %v184_v30 = vmul.f32 %v243_v27, %v183_v29 }
 0x2f0   :  { %v185_v31 = vmul.f32 %v241_v25, %v184_v30 }
 0x2f2   :  { %186 = vst [vmem:[%s300_s3] sm:$0xff] %v185_v31 }

</bundles_post_ra>
